<compile_context>
chip_gen: v6e
topology: v6e:2x2x1
jax: 0.10.0
libtpu: 0.0.40
codegen_flags: <defaults>
</compile_context>

<pallas_src>
import math

import jax
import jax.numpy as jnp
from jax.experimental import pallas as pl
from jax.experimental.pallas import tpu as pltpu


# --------------------------------------------------------------------------
# Kernels
# --------------------------------------------------------------------------
def _flatten_dma_copy_kernel(x_hbm_ref, o_hbm_ref):
    """HBM -> HBM copy of the whole (already flattened) array via DMA."""
    def body(sem):
        copy = pltpu.make_async_copy(x_hbm_ref, o_hbm_ref, sem)
        copy.start()
        copy.wait()

    pl.run_scoped(body, pltpu.SemaphoreType.DMA)


def _flatten_vmem_copy_kernel(x_ref, o_ref):
    """Pure VMEM tile copy of a sublane/lane-dense block."""
    o_ref[...] = x_ref[...]


# --------------------------------------------------------------------------
# Helpers
# --------------------------------------------------------------------------
def _round_up(x: int, m: int) -> int:
    return (x + m - 1) // m * m


def _sublane_group(dtype) -> int:
    """Rows per dense sublane group: 8 for 32-bit, 16 for bf16, 32 for int8."""
    itemsize = jnp.dtype(dtype).itemsize
    return max(8, (4 // itemsize) * 8)


def _pick_lane_width(total: int, sub: int, max_lanes: int = 2048):
    """Largest multiple of 128 (<= max_lanes) giving a pad-free 2-D slab.

    Prefers widths where the resulting row count is also a multiple of the
    sublane group (fully dense tiles, no partial edge block).  Returns
    (lane_width, needs_pad).
    """
    top = min(max_lanes, (total // 128) * 128)
    for lanes in range(top, 0, -128):
        if total % (lanes * sub) == 0:
            return lanes, False
    for lanes in range(top, 0, -128):
        if total % lanes == 0:
            return lanes, False
    # Rare: element count is not a multiple of 128 -> small pad needed.
    return 512, True


def _flatten_copy_vmem(flat, total, itemsize, sub, target_tile_bytes):
    lanes, needs_pad = _pick_lane_width(total, sub)
    padded_total = _round_up(total, lanes) if needs_pad else total
    if padded_total != total:
        # Rare path (total not a multiple of 128).
        # TODO(synk): handle the <lane-width tail with a masked store inside
        # the kernel instead of an XLA pad/slice copy.
        flat = jnp.pad(flat, (0, padded_total - total))
    rows = padded_total // lanes
    x2d = flat.reshape(rows, lanes)

    # Row tile: multiple of the sublane group, ~target_tile_bytes per tile.
    target_rows = max(sub, (target_tile_bytes // (lanes * itemsize)) // sub * sub)
    tb = min(target_rows, _round_up(rows, sub))
    if rows > sub:
        # At least 2 grid steps so the "parallel" axis can shard across both
        # TensorCores on v7x (neutral on single-TC v5e/v6e).
        tb = min(tb, _round_up(pl.cdiv(rows, 2), sub))
    if tb > rows:
        tb = rows  # single block whose dims equal the array dims (allowed)

    grid = (pl.cdiv(rows, tb),)

    out2d = pl.pallas_call(
        _flatten_vmem_copy_kernel,
        out_shape=jax.ShapeDtypeStruct((rows, lanes), flat.dtype),
        grid=grid,
        in_specs=[pl.BlockSpec((tb, lanes), lambda i: (i, 0))],
        out_specs=pl.BlockSpec((tb, lanes), lambda i: (i, 0)),
        cost_estimate=pl.CostEstimate(
            flops=0, transcendentals=0,
            bytes_accessed=2 * padded_total * itemsize),
        compiler_params=pltpu.CompilerParams(
            dimension_semantics=("parallel",),
            # 4 MiB tiles x 4 buffers = 16 MiB exceeds v5e's 16 MiB default
            # scoped VMEM; 32 MiB covers v5e/v6e/v7x with headroom.
            vmem_limit_bytes=32 * 1024 * 1024,
        ),
    )(x2d)

    out = out2d.reshape(padded_total)
    if padded_total != total:
        out = out[:total]
    return out


# --------------------------------------------------------------------------
# Public wrapper (forward pass of the PyTorch Flatten module)
# --------------------------------------------------------------------------
def flatten_forward(
    x: jax.Array,
    *,
    mode: str = "dma",                 # "dma" | "vmem" | "reshape"
    target_tile_bytes: int = 4 * 1024 * 1024,
) -> jax.Array:
    """Equivalent of `x.view(-1, prod(x.shape[1:]))`."""
    b = x.shape[0]
    n = math.prod(x.shape[1:])
    total = b * n

    if mode == "reshape" or total == 0:
        # Preferred metadata-only path (what torch .view does).
        return x.reshape(b, n)

    itemsize = jnp.dtype(x.dtype).itemsize

    if mode == "dma":
        # Flatten semantics happen in the reshape; the mandated data movement
        # is a single HBM->HBM DMA (no VMEM bounce, no padding, no tiling).
        x2 = x.reshape(b, n)
        return pl.pallas_call(
            _flatten_dma_copy_kernel,
            out_shape=jax.ShapeDtypeStruct((b, n), x.dtype),
            in_specs=[pl.BlockSpec(memory_space=pl.ANY)],
            out_specs=pl.BlockSpec(memory_space=pl.ANY),
            cost_estimate=pl.CostEstimate(
                flops=0, transcendentals=0,
                bytes_accessed=2 * total * itemsize),
        )(x2)

    # mode == "vmem": tiled, lane/sublane-dense, pipelined VMEM copy.
    sub = _sublane_group(x.dtype)
    flat = x.reshape(total)
    out = _flatten_copy_vmem(flat, total, itemsize, sub, target_tile_bytes)
    return out.reshape(b, n)


# --------------------------------------------------------------------------
# Demo / self-test
# --------------------------------------------------------------------------
if __name__ == "__main__":
    key = jax.random.PRNGKey(0)
    # Small NCHW input consistent with a CNN feature map: (N=2, C=4, H=16, W=16)
    x = jax.random.normal(key, (2, 4, 16, 16), dtype=jnp.float32)
    y_ref = x.reshape(x.shape[0], -1)

    # Default path: single HBM->HBM DMA copy.
    y_dma = jax.block_until_ready(flatten_forward(x, mode="dma"))
    assert y_dma.shape == (2, 4 * 16 * 16), y_dma.shape
    assert y_dma.dtype == x.dtype
    assert bool(jnp.array_equal(y_dma, y_ref))

    # Tiled VMEM path (adaptive lane width -> no pad for this shape).
    y_vmem = jax.block_until_ready(flatten_forward(x, mode="vmem"))
    assert bool(jnp.array_equal(y_vmem, y_ref))

    # Non-multiple-of-128 element count exercises the rare padded-tail path.
    x_odd = jax.random.normal(jax.random.PRNGKey(0), (2, 3, 5, 7), jnp.float32)
    y_odd = jax.block_until_ready(flatten_forward(x_odd, mode="vmem"))
    assert bool(jnp.array_equal(y_odd, x_odd.reshape(2, -1)))

    # bf16 exercises the dtype-aware sublane grouping (16-row groups).
    x_bf = x.astype(jnp.bfloat16)
    y_bf = jax.block_until_ready(flatten_forward(x_bf, mode="vmem"))
    assert bool(jnp.array_equal(y_bf, x_bf.reshape(2, -1)))

    # Metadata-only path agrees too.
    assert bool(jnp.array_equal(flatten_forward(x, mode="reshape"), y_ref))

    print("KERNEL_OK")
</pallas_src>

<mosaic_0001>
module attributes {stable_mosaic.version = 11 : i64} {
  func.func @_flatten_dma_copy_kernel(%arg0: memref<2x1024xf32, #tpu.memory_space<any>>, %arg1: memref<2x1024xf32, #tpu.memory_space<any>>) attributes {dimension_semantics = [], scalar_prefetch = 0 : i64, scratch_operands = 0 : i64, tpu.core_type = #tpu.core_type<tc>} {
    "tpu.region"() ({
      %0 = tpu.sem_alloc : memref<!tpu.dma_semaphore, #tpu.memory_space<semaphore_mem>>
      tpu.enqueue_dma source(%arg0 : memref<2x1024xf32, #tpu.memory_space<any>>) target(%arg1 : memref<2x1024xf32, #tpu.memory_space<any>>) target_semaphore(%0 : memref<!tpu.dma_semaphore, #tpu.memory_space<semaphore_mem>>)
      tpu.wait_dma2 semaphore(%0 : memref<!tpu.dma_semaphore, #tpu.memory_space<semaphore_mem>>) src(%arg0 : memref<2x1024xf32, #tpu.memory_space<any>>) dst(%arg1 : memref<2x1024xf32, #tpu.memory_space<any>>)
      tpu.yield
    }) : () -> ()
    return
  }
}

</mosaic_0001>

<bundles_post_ra>
// kernel: tpu_custom_call.1
= control target key start
LH: loop header
LB: loop body
LE: loop exit
PB: predicated region body
PF: predicated region fallthrough
CT: control target
= control target key end

     0   :  { %s22_s6 = smov [#allocation2]   ;;  %s23_s7 = smov 131072   ;;  %s41_s0 = inlined_call_operand.hbm [shape: f32[2,1024], index: 0, kind: input, shape index: {}]   ;;  %s42_s1 = inlined_call_operand.hbm [shape: f32[2,1024], index: 1, kind: output, shape index: {}]  }
   0x1   :  { %s24_s8 = smov 0  }
   0x2   :  { %12 = dma.general %s41_s0, 256, %s42_s1, %s22_s6, %s23_s7, [#allocation4], %s24_s8, 0  }
   0x3   :  { %20 = dma.done.wait [#allocation2], 256 }
   0x4   :  { %21 = vsyncadd [#allocation2], 4294967040 }

</bundles_post_ra>
